<compile_context>
chip_gen: v6e
topology: v6e:2x2x1
jax: 0.10.0
libtpu: 0.0.40
codegen_flags: <defaults>
</compile_context>

<pallas_src>
import jax
import jax.numpy as jnp
from jax.experimental import pallas as pl
from jax.experimental.pallas import tpu as pltpu


def _round_up(x, m):
    return (x + m - 1) // m * m


def _conv1x1_bn_act_kernel(w_ref, x_ref, shift_ref, o_ref):
    # w_ref:     (tn, Cin)     weight tile (BN scale pre-folded)
    # x_ref:     (Cin, t_hw)   input tile for one batch element (N squeezed)
    # shift_ref: (tn, 1)       fused BN shift (zeros if no BN)
    # o_ref:     (tn, t_hw)    lane-dense output tile (t_hw % 128 == 0)
    acc = jnp.dot(w_ref[...], x_ref[...], preferred_element_type=jnp.float32)
    acc = acc + shift_ref[...]
    o_ref[...] = jnp.maximum(acc, 0.0).astype(o_ref.dtype)


def conv2d_pipe_forward(x_nchw, weight, *, use_bn=False, bn_params=None,
                        compute_dtype=None, t_hw_max=2048, tn_max=256):
    """Forward pass of conv2d_pipe (kernel_size=1, bias=False, [BN], ReLU).

    x_nchw: (N, Cin, H, W) float32 (PyTorch NCHW layout)
    weight: (Cout, Cin, 1, 1)       (PyTorch Conv2d weight layout)
    bn_params: (gamma, beta, running_mean, running_var, eps) when use_bn.
    compute_dtype: e.g. jnp.bfloat16 to halve HBM bytes / use bf16 MXU on
                   v6e/v7x; accumulation and the BN/ReLU epilogue stay f32.
    """
    n, cin, h, w_sp = x_nchw.shape
    cout = weight.shape[0]
    hw = h * w_sp
    out_dtype = x_nchw.dtype
    cdt = compute_dtype if compute_dtype is not None else x_nchw.dtype

    # --- glue: fold BN (eval-mode) into weight scale + shift ---------------
    w_mat = weight.reshape(cout, cin).astype(jnp.float32)
    if use_bn:
        gamma, beta, rmean, rvar, eps = bn_params
        inv_std = 1.0 / jnp.sqrt(rvar + eps)
        scale = gamma * inv_std                          # (Cout,)
        shift = (beta - rmean * scale).reshape(cout, 1).astype(jnp.float32)
        w_mat = w_mat * scale[:, None]                   # fold scale into W
    else:
        shift = jnp.zeros((cout, 1), jnp.float32)

    # --- tile selection (lane axis = H*W, sublane axis = Cout) -------------
    tn = min(_round_up(cout, 8), max(8, _round_up(tn_max, 8)))   # Cout tile
    cout_p = _round_up(cout, tn)
    hw_128 = _round_up(hw, 128)
    vmem_block_budget = 12 * 1024 * 1024                 # working-set target
    t_hw_cap = max(128, (vmem_block_budget // (8 * (cin + tn))) // 128 * 128)
    t_hw = min(hw_128, t_hw_cap, max(128, _round_up(t_hw_max, 128)))
    hw_p = _round_up(hw, t_hw)

    # --- glue: free reshape + zero-pad to tile multiples (sliced back) -----
    x3 = x_nchw.reshape(n, cin, hw)
    if hw_p != hw:
        x3 = jnp.pad(x3, ((0, 0), (0, 0), (0, hw_p - hw)))
    if cout_p != cout:
        w_mat = jnp.pad(w_mat, ((0, cout_p - cout), (0, 0)))
        shift = jnp.pad(shift, ((0, cout_p - cout), (0, 0)))

    x3 = x3.astype(cdt)
    w_mat = w_mat.astype(cdt)

    in_isz = jnp.dtype(cdt).itemsize
    out_isz = jnp.dtype(out_dtype).itemsize
    block_bytes = (2 * cin * t_hw * in_isz          # x tile, double-buffered
                   + 2 * tn * cin * in_isz          # weight tile, dbl-buf
                   + 2 * tn * t_hw * out_isz        # output tile, dbl-buf
                   + 2 * tn * 4)                    # shift
    # Explicit scoped-VMEM limit: above v5e's 16 MiB default, below v7x's
    # 64 MiB physical.
    vmem_limit = int(min(48 * 1024 * 1024,
                         max(32 * 1024 * 1024, 2 * block_bytes)))

    cost = pl.CostEstimate(
        flops=2 * n * cout * cin * hw,
        transcendentals=0,
        bytes_accessed=int(n * cin * hw_p * in_isz
                           + cout_p * cin * in_isz
                           + n * cout_p * hw_p * out_isz),
    )

    # Innermost axis = Cout tiles: X tile (the big operand) stays resident
    # across it, only the small weight/shift tiles are re-fetched.
    grid = (n, hw_p // t_hw, cout_p // tn)

    out = pl.pallas_call(
        _conv1x1_bn_act_kernel,
        out_shape=jax.ShapeDtypeStruct((n, cout_p, hw_p), out_dtype),
        grid_spec=pltpu.PrefetchScalarGridSpec(
            num_scalar_prefetch=0,
            grid=grid,
            in_specs=[
                pl.BlockSpec((tn, cin), lambda b, i, j: (j, 0)),             # W
                pl.BlockSpec((None, cin, t_hw), lambda b, i, j: (b, 0, i)),  # X
                pl.BlockSpec((tn, 1), lambda b, i, j: (j, 0)),               # shift
            ],
            out_specs=pl.BlockSpec((None, tn, t_hw), lambda b, i, j: (b, j, i)),
        ),
        compiler_params=pltpu.CompilerParams(
            dimension_semantics=("parallel", "parallel", "parallel"),
            vmem_limit_bytes=vmem_limit),
        cost_estimate=cost,
    )(w_mat, x3, shift)

    # --- glue: slice off padding, free reshape back to NCHW ----------------
    return out[:, :cout, :hw].reshape(n, cout, h, w_sp)


# TODO(synk): kernel_size>1 / stride / padding / groups variants of the
# module would need an im2col (or halo-DMA) path; only the default 1x1
# configuration is implemented here.


if __name__ == "__main__":
    key = jax.random.PRNGKey(0)
    k_x, k_w, k_g, k_b, k_m, k_v, k_x2, k_w2 = jax.random.split(key, 8)

    # --- case 1: default module config (use_bn=False, ReLU), f32 -----------
    batch, in_ch, out_ch, hw = 2, 4, 8, 16
    x = jax.random.normal(k_x, (batch, in_ch, hw, hw), dtype=jnp.float32)
    weight = jax.random.normal(k_w, (out_ch, in_ch, 1, 1),
                               dtype=jnp.float32) * 0.1

    out = conv2d_pipe_forward(x, weight, use_bn=False)
    out = jax.block_until_ready(out)

    ref = jnp.einsum('nchw,oc->nohw', x, weight.reshape(out_ch, in_ch))
    ref = jnp.maximum(ref, 0.0)
    assert out.shape == (batch, out_ch, hw, hw)
    assert jnp.allclose(out, ref, atol=1e-5, rtol=1e-5)

    # --- case 2: use_bn=True, ragged shapes (exercises pad + slice path) ---
    b2, c2_in, c2_out, h2, w2 = 2, 3, 5, 10, 10
    x2 = jax.random.normal(k_x2, (b2, c2_in, h2, w2), dtype=jnp.float32)
    w2_ = jax.random.normal(k_w2, (c2_out, c2_in, 1, 1),
                            dtype=jnp.float32) * 0.2
    gamma = 1.0 + 0.1 * jax.random.normal(k_g, (c2_out,), jnp.float32)
    beta = 0.1 * jax.random.normal(k_b, (c2_out,), jnp.float32)
    rmean = 0.1 * jax.random.normal(k_m, (c2_out,), jnp.float32)
    rvar = jax.nn.softplus(jax.random.normal(k_v, (c2_out,), jnp.float32)) + 0.5
    eps = 1e-5

    out2 = conv2d_pipe_forward(x2, w2_, use_bn=True,
                               bn_params=(gamma, beta, rmean, rvar, eps))
    out2 = jax.block_until_ready(out2)

    conv2 = jnp.einsum('nchw,oc->nohw', x2, w2_.reshape(c2_out, c2_in))
    inv_std = 1.0 / jnp.sqrt(rvar + eps)
    ref2 = ((conv2 - rmean[None, :, None, None])
            * (gamma * inv_std)[None, :, None, None]
            + beta[None, :, None, None])
    ref2 = jnp.maximum(ref2, 0.0)
    assert out2.shape == (b2, c2_out, h2, w2)
    assert jnp.allclose(out2, ref2, atol=1e-4, rtol=1e-4)

    print("KERNEL_OK")
</pallas_src>

<mosaic_0001>
module attributes {stable_mosaic.version = 11 : i64} {
  func.func @_conv1x1_bn_act_kernel(%arg0: i32, %arg1: i32, %arg2: i32, %arg3: memref<8x4xf32, #tpu.memory_space<vmem>>, %arg4: memref<1x4x256xf32, #tpu.memory_space<vmem>>, %arg5: memref<8x1xf32, #tpu.memory_space<vmem>>, %arg6: memref<1x8x256xf32, #tpu.memory_space<vmem>>) attributes {dimension_semantics = [#tpu.dimension_semantics<parallel>, #tpu.dimension_semantics<parallel>, #tpu.dimension_semantics<parallel>], iteration_bounds = array<i64: 2, 1, 1>, scalar_prefetch = 0 : i64, scratch_operands = 0 : i64, tpu.core_type = #tpu.core_type<tc>, window_params = [{transform_indices = @transform_0, window_bounds = array<i64: 8, 4>}, {transform_indices = @transform_1, window_bounds = array<i64: 1, 4, 256>}, {transform_indices = @transform_2, window_bounds = array<i64: 8, 1>}, {transform_indices = @transform_3, window_bounds = array<i64: 1, 8, 256>}]} {
    %c0 = arith.constant 0 : index
    %c0_0 = arith.constant 0 : index
    %0 = vector.load %arg3[%c0, %c0_0] : memref<8x4xf32, #tpu.memory_space<vmem>>, vector<8x4xf32>
    %c0_1 = arith.constant 0 : index
    %c0_2 = arith.constant 0 : index
    %c0_3 = arith.constant 0 : index
    %1 = vector.load %arg4[%c0_1, %c0_2, %c0_3] : memref<1x4x256xf32, #tpu.memory_space<vmem>>, vector<1x4x256xf32>
    %2 = vector.shape_cast %1 : vector<1x4x256xf32> to vector<4x256xf32>
    %cst = arith.constant dense<0.000000e+00> : vector<8x256xf32>
    %3 = tpu.matmul %0, %2, %cst {dimension_numbers = #tpu.dot_dimension_numbers<[1], [0], [0], [1], [0, 0, 1, 1], [], []>} : vector<8x4xf32>, vector<4x256xf32>, vector<8x256xf32> -> vector<8x256xf32>
    %c0_4 = arith.constant 0 : index
    %c0_5 = arith.constant 0 : index
    %4 = vector.load %arg5[%c0_4, %c0_5] : memref<8x1xf32, #tpu.memory_space<vmem>>, vector<8x1xf32>
    %5 = vector.broadcast %4 : vector<8x1xf32> to vector<8x256xf32>
    %6 = arith.addf %3, %5 : vector<8x256xf32>
    %cst_6 = arith.constant 0.000000e+00 : f32
    %7 = vector.broadcast %cst_6 : f32 to vector<8x256xf32>
    %8 = arith.maximumf %6, %7 : vector<8x256xf32>
    %c0_7 = arith.constant 0 : index
    %c0_8 = arith.constant 0 : index
    %c0_9 = arith.constant 0 : index
    %9 = vector.load %arg6[%c0_7, %c0_8, %c0_9] : memref<1x8x256xf32, #tpu.memory_space<vmem>>, vector<1x8x256xf32>
    %10 = vector.shape_cast %9 : vector<1x8x256xf32> to vector<8x256xf32>
    %11 = vector.shape_cast %8 : vector<8x256xf32> to vector<1x8x256xf32>
    tpu.vector_store %arg6[%c0_7, %c0_8, %c0_9], %11 {strides = array<i32>} : memref<1x8x256xf32, #tpu.memory_space<vmem>>, vector<1x8x256xf32>,
    return
  }
  func.func @transform_0(%arg0: i32, %arg1: i32, %arg2: i32) -> (i32, i32) {
    %c0_i32 = arith.constant 0 : i32
    %c0_i32_0 = arith.constant 0 : i32
    return %arg2, %c0_i32 : i32, i32
  }
  func.func @transform_1(%arg0: i32, %arg1: i32, %arg2: i32) -> (i32, i32, i32) {
    %c0_i32 = arith.constant 0 : i32
    %c0_i32_0 = arith.constant 0 : i32
    return %arg0, %c0_i32, %arg1 : i32, i32, i32
  }
  func.func @transform_2(%arg0: i32, %arg1: i32, %arg2: i32) -> (i32, i32) {
    %c0_i32 = arith.constant 0 : i32
    %c0_i32_0 = arith.constant 0 : i32
    return %arg2, %c0_i32 : i32, i32
  }
  func.func @transform_3(%arg0: i32, %arg1: i32, %arg2: i32) -> (i32, i32, i32) {
    %c0_i32 = arith.constant 0 : i32
    return %arg0, %arg2, %arg1 : i32, i32, i32
  }
}

</mosaic_0001>

<bundles_post_ra>
// kernel: tpu_custom_call.1
= control target key start
LH: loop header
LB: loop body
LE: loop exit
PB: predicated region body
PF: predicated region fallthrough
CT: control target
= control target key end

     0   :  { %8 = vsyncpa [#allocation3], 0  ;;  %s752_s0 = inlined_call_operand.vmem [shape: f32[8,4], index: 0, kind: input, shape index: {}]   ;;  %s753_s1 = inlined_call_operand.vmem [shape: f32[2,4,256], index: 1, kind: input, shape index: {}]   ;;  %s754_s2 = inlined_call_operand.vmem [shape: f32[8,1], index: 2, kind: input, shape index: {}]   ;;  %s755_s3 = inlined_call_operand.hbm [shape: f32[2,8,256], index: 3, kind: output, shape index: {}]  }
   0x1   :  { %10 = vsyncpa [#allocation3 + $0x1], 0  ;;  %s647_s12 = smov 0   ;;  %s649_s13 = smov 0  }
   0x2   :  { %s651_s14 = smov 0   ;;  %s653_s15 = smov 0  }
   0x3   :  { %s655_s16 = smov 0   ;;  %s657_s17 = smov 0  }
   0x4 LB: > { %s467_s18 = sadd.s32 4294967295, %s622_s17   ;;  %s468_s19 = sadd.s32 4294967294, %s622_s17   ;;  %s622_s17 = sphi %s657_s17, %s16_s17   ;;  %s618_s16 = sphi %s655_s16, %s762_s16   ;;  %s614_s15 = sphi %s653_s15, %s761_s15   ;;  %s610_s14 = sphi %s651_s14, %s760_s14   ;;  %s606_s13 = sphi %s649_s13, %s759_s13   ;;  %s602_s12 = sphi %s647_s12, %s758_s12  }
   0x5   : > { %s35_s20 = sadd.s32 1, %s618_s16  ;;  %s126_s21 = sadd.s32 1, %s610_s14 }
   0x6   : > { %p37_p0 = scmp.ge.s32.totalorder %s35_s20, 2  ;;  %p136_p1 = scmp.ne.s32.totalorder %s610_s14, %s606_s13 }
   0x7   : > { %p137_p2 = scmp.eq.s32.totalorder %s467_s18, 1  ;;  %p142_p3 = scmp.ne.s32.totalorder %s606_s13, %s602_s12 }
   0x8   : > { %s764_s20 = smov (%p37_p0, %s35_s20), 0  ;;  %p143_p5 = scmp.eq.s32.totalorder %s468_s19, 1 }
   0x9   : > { %p687_p4 = por %p137_p2, %p136_p1  ;;  %s119_s23 = ssub.s32 %s618_s16, %s764_s20 }
   0xa   : > { %p473_p6 = scmp.ge.s32.totalorder %s622_s17, 1  ;;  %p124_p7 = scmp.eq.s32.totalorder %s119_s23, 0 }
   0xb   : > { %p694_p8 = por %p143_p5, %p142_p3  ;;  %p188_p9 = scmp.lt.s32.totalorder %s622_s17, 3 }
   0xc   : > { %s700_s25 = scalar_select %p124_p7, %s610_s14, %s126_s21  }
   0xd   : > { %p189_p10 = pnand %p473_p6, %p188_p9 }
   0xe   : > { %p229_p11 = scmp.lt.s32.totalorder (!%p189_p10), %s614_s15, 1  ;;  %s221_s8 = sand.u32 (!%p189_p10), 1, %s606_s13  }
   0xf   : > { %192 = sbr.rel (%p189_p10) target bundleno = 241 (0xf1), region = 32  ;;  %s474_s9 = sshll.u32 (!%p189_p10), %s221_s8, 4 }
  0x10   : > { %s486_s10 = sshll.u32 (!%p189_p10), %s614_s15, 8  ;;  %s223_s11 = scalar_lea.vmem (!%p189_p10), [#allocation2], %s474_s9 }
  0x11   : > { %s356_s18 = sshll.u32 (!%p189_p10), %s223_s11, 4  ;;  %s354_s23 = scalar_lea.hbm (!%p189_p10), %s755_s3, %s486_s10  ;;  %s357_s18 = int_to_ptr.vmem [resolvable:$true] %s356_s18 }
  0x12   : > { %s338_s26 = scalar_lea.sflag (!%p189_p10), [#allocation3], %s221_s8  ;;  %s546_s27 = scalar_lea.vmem (!%p189_p10), %s357_s18, 256 }
  0x13   : > { %p547_p12 = scmp.ne.s32.totalorder (!%p189_p10), %s357_s18, %s546_s27 }
  0x14   : > { %v624_v0 = vmov 0.0   ;;  %v625_v1 = vmov 0   ;;  %v245_v2 = vld [vmem:[%s754_s2] sm:$0xff]  ;;  %s230_s28 = scalar_select %p229_p11, %s614_s15, 1  ;;  %vm257_vm0 = vcmask 1043456   ;;  %vm253_vm1 = vcmask 31744  }
  0x15   : > { %326 = vmatprep.mubr.f32.mxu0 %v624_v0  ;;  %544 = vset.pattern.permute.xlu0 %v625_v1  ;;  %v243_v5 = vld [vmem:[%s752_s0] sm:$0xff]  ;;  %p548_p13 = pnand %p547_p12, %p687_p4 }
  0x16   : > { %248 = vperm.xlu0 %544, %v245_v2   ;;  %s485_s29 = sshll.u32 %s230_s28, 3  ;;  %s626_s28 = smov [#allocation2]  }
  0x17   : > { %s236_s5 = scalar_lea.vmem %s753_s1, %s485_s29  ;;  %p549_p0 = pneg %p548_p13 }
  0x18   : > { %v244_v3 = vld [vmem:[%s236_s5] sm:$0xff]  ;;  %s550_s15 = sshll.u32 %s626_s28, 4  ;;  %s551_s15 = int_to_ptr.vmem [resolvable:$false] %s550_s15 }
  0x19   : > { %v252_v4 = vcombine.high %v244_v3, %v244_v3  ;;  %s552_s29 = scalar_lea.vmem %s551_s15, 512  ;;  %p553_p1 = scmp.lt.s32.totalorder %s357_s18, %s551_s15 }
  0x1a   : > { %p554_p2 = scmp.lt.s32.totalorder %s552_s29, %s546_s27 }
  0x1b   : > { %477 = vmatprep.subr.msk.mxu0 %vm257_vm0, %v252_v4 }
  0x1c   : > { %478 = vmatpush1.msk.msra.mxu0 %vm257_vm0, %v244_v3  ;;  %p555_p3 = por %p554_p2, %p553_p1 }
  0x1d   : > { %479 = vmatmul.mubr.msk.f32.vlgmr.msra.gmra.mxu0 %vm253_vm1, %v243_v5 }
  0x1e   : > { %p556_p5 = pnand %p555_p3, %p549_p0 }
  0x91   : > { %v249_v6 = vpop.permute.xlu0 %248 }
  0xdd   : > { %v328_v7 = vpop.f32.mrf.mxu0 }
  0xde   : > { %v329_v8 = vadd.f32 %v328_v7, %v249_v6 }
  0xdf   : > { %v330_v9 = vpop.f32.mrf.mxu0 }
  0xe0   : > { %v333_v10 = vmax.f32 %v329_v8, 0.0  ;;  %v331_v11 = vadd.f32 %v330_v9, %v249_v6 }
  0xe2   : > { %335 = vst [vmem:[%s223_s11] sm:$0xff] %v333_v10  ;;  %v334_v12 = vmax.f32 %v331_v11, 0.0 }
  0xe4   : > { %336 = vst [vmem:[%s223_s11 + $0x8] sm:$0xff] %v334_v12 }
  0xe5   : > { %559 = shalt.err (!%p556_p5)
}
  0xe6   : > { %s560_s30 = scalar_lea.hbm %s354_s23, 256  ;;  %s564_s6 = scalar_lea.hbm %s755_s3, 512 }
  0xe7   : > { %p561_p6 = scmp.ne.s32.totalorder %s354_s23, %s560_s30  ;;  %p565_p10 = scmp.lt.s32.totalorder %s354_s23, %s755_s3 }
  0xe8   : > { %p566_p11 = scmp.lt.s32.totalorder %s564_s6, %s560_s30 }
  0xe9   : > { %p562_p7 = pnand %p561_p6, %p687_p4 }
  0xea   : > { %p567_p12 = por %p566_p11, %p565_p10 }
  0xeb   : > { %p563_p9 = pneg %p562_p7 }
  0xed   : > { %p568_p13 = pnand %p567_p12, %p563_p9 }
  0xef   : > { %571 = shalt.err (!%p568_p13)
}
  0xf0   : > { %487 = dma.vmem_to_hbm [thread:$0]  (%p687_p4), %s357_s18, 256, %s354_s23, %s338_s26  }
  0xf1 PF: > { %p493_p0 = scmp.ge.s32.totalorder %s622_s17, 2  ;;  %s368_s9 = sand.u32 1, %s602_s12  }
  0xf2   : > { %s369_s10 = scalar_lea.sflag [#allocation3], %s368_s9 }
  0xf3   : > { %p490_p1 = pnand %p493_p0, %p694_p8 }
  0xf5   : > { %p491_p2 = pneg %p490_p1 }
  0xf7   : > { %597 = dma.done.wait (%p491_p2), %s369_s10, 256  }
  0xf8   : > { %599 = vsyncadd (%p491_p2), %s369_s10, 4294967040  ;;  %s16_s17 = sadd.s32 1, %s622_s17   ;;  %s758_s12 = smov %s606_s13 }
  0xf9   : > { %p13_p3 = scmp.ge.s32.totalorder %s16_s17, 4   ;;  %s759_s13 = smov %s610_s14 }
  0xfa   : > { %s760_s14 = smov %s700_s25  ;;  %s761_s15 = smov %s618_s16 }
  0xfb   : > { %s762_s16 = smov %s764_s20  ;;  %15 = sbr.rel (!%p13_p3) target bundleno = 4 (0x4), region = 73 }
 0x100   :  { %374 = vsyncpa [#allocation3], 1 }
 0x101   :  { %376 = vsyncpa [#allocation3 + $0x1], 1 }

</bundles_post_ra>
